<compile_context>
chip_gen: v6e
topology: v6e:2x2x1
jax: 0.10.0
libtpu: 0.0.40
codegen_flags: <defaults>
</compile_context>

<pallas_src>
import functools

import jax
import jax.numpy as jnp
from jax.experimental import pallas as pl
from jax.experimental.pallas import tpu as pltpu

HIDDEN = 128


def dqn_mlp_kernel(x_ref, w1_ref, b1_ref, w2_ref, b2_ref, o_ref):
    # Cast x to bf16 in-kernel (VPU) and run the hidden matmul with f32
    # accumulation on the MXU.
    x = x_ref[...].astype(jnp.bfloat16)
    h = jnp.dot(x, w1_ref[...], preferred_element_type=jnp.float32)
    # Bias-add + ReLU in f32 on the VPU (also the correct path on v5e, which
    # has no bf16 VPU).
    h = jnp.maximum(h + b1_ref[...], 0.0)
    # Output layer: bf16 operands, f32 accumulate; epilogue + final cast.
    out = jnp.dot(h.astype(jnp.bfloat16), w2_ref[...],
                  preferred_element_type=jnp.float32)
    o_ref[...] = (out + b2_ref[...]).astype(o_ref.dtype)


def _round_up(n, m):
    return ((n + m - 1) // m) * m


def prepare_dqn_params(w1, b1, w2, b2):
    """One-time (outside the hot path) cast: bf16 weights for MXU streaming,
    f32 (1, features) biases for the f32 epilogue."""
    return (w1.astype(jnp.bfloat16),
            b1.astype(jnp.float32).reshape(1, -1),
            w2.astype(jnp.bfloat16),
            b2.astype(jnp.float32).reshape(1, -1))


@functools.partial(jax.jit, static_argnames=("tm", "out_dtype"))
def dqn_forward(x, w1b, b1f, w2b, b2f, *, tm=2048, out_dtype=jnp.float32):
    """x: (batch, d_in) f32. w1b/w2b: bf16 (in,out). b1f/b2f: f32 (1,out)."""
    batch, d_in = x.shape
    hidden, d_out = w2b.shape

    # Batch tile: large to amortize the ~0.35us/step grid overhead, rounded to
    # 16 rows (bf16 sublane packing). For moderate batches cap at ~half the
    # batch so the grid length is >= 2 and both TCs get work on v7x.
    half = _round_up(pl.cdiv(batch, 2), 16)
    tm_eff = max(16, min(tm, half))
    grid = (pl.cdiv(batch, tm_eff),)  # ragged last block masked by Pallas

    return pl.pallas_call(
        dqn_mlp_kernel,
        out_shape=jax.ShapeDtypeStruct((batch, d_out), out_dtype),
        grid_spec=pltpu.PrefetchScalarGridSpec(
            num_scalar_prefetch=0,
            grid=grid,
            in_specs=[
                # Per-step batch tile of x (double-buffered by the pipeliner).
                pl.BlockSpec((tm_eff, d_in), lambda i: (i, 0)),
                # Weights / biases: constant block index -> VMEM-resident,
                # DMA'd once, never re-fetched across grid steps.
                pl.BlockSpec((d_in, hidden), lambda i: (0, 0)),
                pl.BlockSpec((1, hidden), lambda i: (0, 0)),
                pl.BlockSpec((hidden, d_out), lambda i: (0, 0)),
                pl.BlockSpec((1, d_out), lambda i: (0, 0)),
            ],
            out_specs=pl.BlockSpec((tm_eff, d_out), lambda i: (i, 0)),
        ),
        compiler_params=pltpu.CompilerParams(
            # Independent batch tiles: shard across both TensorCores on v7x.
            dimension_semantics=("parallel",),
        ),
    )(x, w1b, b1f, w2b, b2f)


def init_dqn_params(key, input_dim, output_dim, hidden=HIDDEN):
    """Deterministic init matching the PyTorch module:
       xavier_uniform_ weights, constant bias = 10.0."""
    k1, k2 = jax.random.split(key)

    def xavier_uniform(k, fan_in, fan_out):
        bound = jnp.sqrt(6.0 / (fan_in + fan_out))
        # Stored as (in, out) — transpose of PyTorch's (out, in); same dist.
        return jax.random.uniform(
            k, (fan_in, fan_out), minval=-bound, maxval=bound, dtype=jnp.float32
        )

    w1 = xavier_uniform(k1, input_dim, hidden)
    b1 = jnp.full((1, hidden), 10.0, dtype=jnp.float32)
    w2 = xavier_uniform(k2, hidden, output_dim)
    b2 = jnp.full((1, output_dim), 10.0, dtype=jnp.float32)
    return w1, b1, w2, b2


def _ref_f32(x, w1, b1, w2, b2):
    return jnp.maximum(x @ w1 + b1, 0.0) @ w2 + b2


def _ref_bf16(x, w1, b1, w2, b2):
    xb = x.astype(jnp.bfloat16)
    w1b = w1.astype(jnp.bfloat16)
    w2b = w2.astype(jnp.bfloat16)
    h = jnp.maximum(
        jnp.dot(xb, w1b, preferred_element_type=jnp.float32) + b1, 0.0)
    return jnp.dot(h.astype(jnp.bfloat16), w2b,
                   preferred_element_type=jnp.float32) + b2


if __name__ == "__main__":
    key = jax.random.PRNGKey(0)
    kx, kx2, kp = jax.random.split(key, 3)

    input_dim, output_dim = 16, 8
    w1, b1, w2, b2 = init_dqn_params(kp, input_dim, output_dim)
    params = prepare_dqn_params(w1, b1, w2, b2)  # one-time cast, not per call

    # Small case (batch=2): single ragged block.
    batch = 2
    x = jax.random.normal(kx, (batch, input_dim), dtype=jnp.float32)
    out = dqn_forward(x, *params)
    jax.block_until_ready(out)
    assert out.shape == (batch, output_dim)

    # (a) Tight check vs. a pure-JAX mirror of the kernel math (bf16 operands,
    #     f32 accumulation).
    assert jnp.allclose(out, _ref_bf16(x, w1, b1, w2, b2), atol=1e-2, rtol=1e-3)
    # (b) Loose check vs. full-f32 PyTorch-semantics reference (tolerance
    #     widened for bf16 weight/activation storage).
    assert jnp.allclose(out, _ref_f32(x, w1, b1, w2, b2), atol=5e-1, rtol=5e-2)

    # Second case (batch=33, non-multiple of the 16-row tile) to exercise the
    # multi-step grid and the masked ragged last block (no pad / no slice).
    batch2 = 33
    x2 = jax.random.normal(kx2, (batch2, input_dim), dtype=jnp.float32)
    out2 = dqn_forward(x2, *params)
    jax.block_until_ready(out2)
    assert out2.shape == (batch2, output_dim)
    assert jnp.allclose(out2, _ref_bf16(x2, w1, b1, w2, b2), atol=1e-2, rtol=1e-3)
    assert jnp.allclose(out2, _ref_f32(x2, w1, b1, w2, b2), atol=5e-1, rtol=5e-2)

    print("KERNEL_OK")
</pallas_src>

<mosaic_0001>
module attributes {stable_mosaic.version = 11 : i64} {
  func.func @dqn_mlp_kernel(%arg0: i32, %arg1: memref<16x16xf32, #tpu.memory_space<vmem>>, %arg2: memref<16x128xbf16, #tpu.memory_space<vmem>>, %arg3: memref<1x128xf32, #tpu.memory_space<vmem>>, %arg4: memref<128x8xbf16, #tpu.memory_space<vmem>>, %arg5: memref<1x8xf32, #tpu.memory_space<vmem>>, %arg6: memref<16x8xf32, #tpu.memory_space<vmem>>) attributes {dimension_semantics = [#tpu.dimension_semantics<parallel>], iteration_bounds = array<i64: 1>, scalar_prefetch = 0 : i64, scratch_operands = 0 : i64, tpu.core_type = #tpu.core_type<tc>, window_params = [{transform_indices = @transform_0, window_bounds = array<i64: 16, 16>}, {pipeline_mode = #tpu.pipeline_mode<synchronous>, transform_indices = @transform_1, window_bounds = array<i64: 16, 128>}, {pipeline_mode = #tpu.pipeline_mode<synchronous>, transform_indices = @transform_2, window_bounds = array<i64: 1, 128>}, {pipeline_mode = #tpu.pipeline_mode<synchronous>, transform_indices = @transform_3, window_bounds = array<i64: 128, 8>}, {pipeline_mode = #tpu.pipeline_mode<synchronous>, transform_indices = @transform_4, window_bounds = array<i64: 1, 8>}, {transform_indices = @transform_5, window_bounds = array<i64: 16, 8>}]} {
    %c0 = arith.constant 0 : index
    %c0_0 = arith.constant 0 : index
    %0 = vector.load %arg1[%c0, %c0_0] : memref<16x16xf32, #tpu.memory_space<vmem>>, vector<16x16xf32>
    %1 = arith.truncf %0 : vector<16x16xf32> to vector<16x16xbf16>
    %c0_1 = arith.constant 0 : index
    %c0_2 = arith.constant 0 : index
    %2 = vector.load %arg2[%c0_1, %c0_2] : memref<16x128xbf16, #tpu.memory_space<vmem>>, vector<16x128xbf16>
    %cst = arith.constant dense<0.000000e+00> : vector<16x128xf32>
    %3 = tpu.matmul %1, %2, %cst {dimension_numbers = #tpu.dot_dimension_numbers<[1], [0], [0], [1], [0, 0, 1, 1], [], []>} : vector<16x16xbf16>, vector<16x128xbf16>, vector<16x128xf32> -> vector<16x128xf32>
    %c0_3 = arith.constant 0 : index
    %c0_4 = arith.constant 0 : index
    %4 = vector.load %arg3[%c0_3, %c0_4] : memref<1x128xf32, #tpu.memory_space<vmem>>, vector<1x128xf32>
    %5 = vector.broadcast %4 : vector<1x128xf32> to vector<16x128xf32>
    %6 = arith.addf %3, %5 : vector<16x128xf32>
    %cst_5 = arith.constant 0.000000e+00 : f32
    %7 = vector.broadcast %cst_5 : f32 to vector<16x128xf32>
    %8 = arith.maximumf %6, %7 : vector<16x128xf32>
    %9 = arith.truncf %8 : vector<16x128xf32> to vector<16x128xbf16>
    %c0_6 = arith.constant 0 : index
    %c0_7 = arith.constant 0 : index
    %10 = vector.load %arg4[%c0_6, %c0_7] : memref<128x8xbf16, #tpu.memory_space<vmem>>, vector<128x8xbf16>
    %cst_8 = arith.constant dense<0.000000e+00> : vector<16x8xf32>
    %11 = tpu.matmul %9, %10, %cst_8 {dimension_numbers = #tpu.dot_dimension_numbers<[1], [0], [0], [1], [0, 0, 1, 1], [], []>} : vector<16x128xbf16>, vector<128x8xbf16>, vector<16x8xf32> -> vector<16x8xf32>
    %c0_9 = arith.constant 0 : index
    %c0_10 = arith.constant 0 : index
    %12 = vector.load %arg5[%c0_9, %c0_10] : memref<1x8xf32, #tpu.memory_space<vmem>>, vector<1x8xf32>
    %13 = vector.broadcast %12 : vector<1x8xf32> to vector<16x8xf32>
    %14 = arith.addf %11, %13 : vector<16x8xf32>
    %c0_11 = arith.constant 0 : index
    %c0_12 = arith.constant 0 : index
    %15 = vector.load %arg6[%c0_11, %c0_12] : memref<16x8xf32, #tpu.memory_space<vmem>>, vector<16x8xf32>
    tpu.vector_store %arg6[%c0_11, %c0_12], %14 {strides = array<i32>} : memref<16x8xf32, #tpu.memory_space<vmem>>, vector<16x8xf32>,
    return
  }
  func.func @transform_0(%arg0: i32) -> (i32, i32) {
    %c0_i32 = arith.constant 0 : i32
    %c0_i32_0 = arith.constant 0 : i32
    return %arg0, %c0_i32 : i32, i32
  }
  func.func @transform_1(%arg0: i32) -> (i32, i32) {
    %c0_i32 = arith.constant 0 : i32
    %c0_i32_0 = arith.constant 0 : i32
    %c0_i32_1 = arith.constant 0 : i32
    return %c0_i32, %c0_i32_0 : i32, i32
  }
  func.func @transform_2(%arg0: i32) -> (i32, i32) {
    %c0_i32 = arith.constant 0 : i32
    %c0_i32_0 = arith.constant 0 : i32
    %c0_i32_1 = arith.constant 0 : i32
    return %c0_i32, %c0_i32_0 : i32, i32
  }
  func.func @transform_3(%arg0: i32) -> (i32, i32) {
    %c0_i32 = arith.constant 0 : i32
    %c0_i32_0 = arith.constant 0 : i32
    %c0_i32_1 = arith.constant 0 : i32
    return %c0_i32, %c0_i32_0 : i32, i32
  }
  func.func @transform_4(%arg0: i32) -> (i32, i32) {
    %c0_i32 = arith.constant 0 : i32
    %c0_i32_0 = arith.constant 0 : i32
    %c0_i32_1 = arith.constant 0 : i32
    return %c0_i32, %c0_i32_0 : i32, i32
  }
  func.func @transform_5(%arg0: i32) -> (i32, i32) {
    %c0_i32 = arith.constant 0 : i32
    %c0_i32_0 = arith.constant 0 : i32
    return %arg0, %c0_i32 : i32, i32
  }
}

</mosaic_0001>

<bundles_post_ra>
// kernel: dqn_forward.1
= control target key start
LH: loop header
LB: loop body
LE: loop exit
PB: predicated region body
PF: predicated region fallthrough
CT: control target
= control target key end

     0   :  { %10 = vsyncpa [#allocation3], 0  ;;  %v304_v1 = vmov 0.0   ;;  %vm305_vm0 = vmmov 0   ;;  %vm40_vm1 = vcmask 130048   ;;  %vm200_vm2 = vcmask 64512   ;;  %s381_s0 = inlined_call_operand.vmem [shape: f32[2,16], index: 0, kind: input, shape index: {}]   ;;  %s382_s1 = inlined_call_operand.vmem [shape: bf16[16,128], index: 1, kind: input, shape index: {}]   ;;  %s383_s2 = inlined_call_operand.vmem [shape: f32[1,128], index: 2, kind: input, shape index: {}]   ;;  %s384_s3 = inlined_call_operand.vmem [shape: bf16[128,8], index: 3, kind: input, shape index: {}]   ;;  %s385_s4 = inlined_call_operand.vmem [shape: f32[1,8], index: 4, kind: input, shape index: {}]   ;;  %s386_s5 = inlined_call_operand.hbm [shape: f32[2,8], index: 5, kind: output, shape index: {}]  }
   0x1   :  { %v273_v0 = vld [vmem:[%s382_s1] sm:$0xff]   ;;  %242 = vmatprep.subr.bf16.mxu0 %v304_v1  ;;  %v23_v3 = vld [vmem:[%s381_s0 + $0x8] sm:$0xff]  ;;  %248 = vmatprep.subr.bf16.mxu1 %v304_v1  ;;  %v274_v5 = vld [vmem:[%s384_s3 + $0x38] sm:$0xff]  }
   0x2   :  { %v22_v2 = vld [vmem:[%s381_s0] sm:$0xff]  ;;  %243 = vmatpush3.bf16.msra.mxu0 %v273_v0  ;;  %244 = vmatprep.mubr.msk.bf16.mxu0 %vm305_vm0, %v304_v1  ;;  %v275_v6 = vld [vmem:[%s384_s3 + $0x30] sm:$0xff]   ;;  %v276_v7 = vld [vmem:[%s384_s3 + $0x28] sm:$0xff]  }
   0x3   :  { %v24_v4 = vpack.c.bf16 %v23_v3, %v22_v2  ;;  %264 = vmatprep.mubr.msk.bf16.mxu1 %vm305_vm0, %v304_v1  ;;  %249 = vmatpush3.bf16.msra.mxu1 %v274_v5  ;;  %v277_v8 = vld [vmem:[%s384_s3 + $0x20] sm:$0xff]   ;;  %v278_v9 = vld [vmem:[%s384_s3 + $0x18] sm:$0xff]   ;;  %v279_v10 = vld [vmem:[%s384_s3 + $0x10] sm:$0xff]  }
   0x4   :  { %250 = vmatprep.subr.bf16.mxu1 %v304_v1  ;;  %v280_v11 = vld [vmem:[%s384_s3 + $0x8] sm:$0xff]   ;;  %v281_v12 = vld [vmem:[%s384_s3] sm:$0xff]  }
   0x5   :  { %245 = vmatmul.mubr.msk.bf16.vlgmr.msra.gmra.mxu0 %vm40_vm1, %v24_v4  ;;  %v219_v13 = vld [vmem:[%s383_s2] ss:$0 sm:$0xff] }
   0x6   :  { %v222_v23 = vld [vmem:[%s385_s4] ss:$0 sm:$0xff] }
   0x7   :  { %251 = vmatpush3.bf16.msra.mxu1 %v275_v6 }
   0x8   :  { %252 = vmatprep.subr.bf16.mxu1 %v304_v1 }
   0xb   :  { %253 = vmatpush3.bf16.msra.mxu1 %v276_v7 }
   0xc   :  { %254 = vmatprep.subr.bf16.mxu1 %v304_v1 }
   0xf   :  { %255 = vmatpush3.bf16.msra.mxu1 %v277_v8 }
  0x10   :  { %256 = vmatprep.subr.bf16.mxu1 %v304_v1 }
  0x13   :  { %257 = vmatpush3.bf16.msra.mxu1 %v278_v9 }
  0x14   :  { %258 = vmatprep.subr.bf16.mxu1 %v304_v1 }
  0x17   :  { %259 = vmatpush3.bf16.msra.mxu1 %v279_v10 }
  0x18   :  { %260 = vmatprep.subr.bf16.mxu1 %v304_v1 }
  0x1b   :  { %261 = vmatpush3.bf16.msra.mxu1 %v280_v11 }
  0x1c   :  { %262 = vmatprep.subr.bf16.mxu1 %v304_v1 }
  0x1f   :  { %263 = vmatpush3.bf16.msra.mxu1 %v281_v12 }
  0xc5   :  { %v78_v14 = vpop.f32.mrf.mxu0 }
  0xc6   :  { %v79_v16 = vadd.f32 %v219_v13, %v78_v14 }
  0xc7   :  { %v246_v15 = vpop.f32.mrf.mxu0 }
  0xc8   :  { %v85_v20 = vmax.f32 %v79_v16, 0.0 }
  0xc9   :  { %v81_v17 = vpop.f32.mrf.mxu0 }
  0xca   :  { %v82_v18 = vadd.f32 %v219_v13, %v81_v17 }
  0xcb   :  { %v247_v19 = vpop.f32.mrf.mxu0 }
  0xcc   :  { %v86_v21 = vmax.f32 %v82_v18, 0.0 }
  0xce   :  { %v87_v22 = vpack.c.bf16 %v86_v21, %v85_v20 }
  0xd0   :  { %265 = vmatmul.mubr.bf16.vlgmr.msra.gmra.mxu1 %v87_v22 }
 0x190   :  { %v193_v24 = vpop.f32.mrf.mxu1 }
 0x191   :  { %v194_v25 = vadd.f32 %v222_v23, %v193_v24 }
 0x192   :  { %v266_v26 = vpop.f32.mrf.mxu1 }
 0x193   :  { %201 = vst.msk [vmem:[#allocation2] sm:$0xff] %vm200_vm2, %v194_v25 }
 0x194   :  { %v196_v27 = vpop.f32.mrf.mxu1 }
 0x195   :  { %v197_v28 = vadd.f32 %v222_v23, %v196_v27 }
 0x196   :  { %v267_v29 = vpop.f32.mrf.mxu1 }
 0x197   :  { %202 = vst.msk [vmem:[#allocation2 + $0x8] sm:$0xff] %vm200_vm2, %v197_v28 }
 0x198   :  { %207 = vsyncadd [#allocation3], 224  ;;  %s306_s2 = smov [#allocation2]  }
 0x199   :  { %s208_s3 = sshll.u32 %s306_s2, 4  ;;  %s209_s3 = int_to_ptr.vmem [resolvable:$true] %s208_s3 }
 0x19a   :  { %s282_s17 = scalar_lea.vmem %s209_s3, 32  ;;  %s286_s18 = scalar_lea.vmem %s209_s3, 256 }
 0x19b   :  { %p283_p0 = scmp.ne.s32.totalorder %s209_s3, %s282_s17  ;;  %p287_p1 = scmp.lt.s32.totalorder %s209_s3, %s209_s3 }
 0x19c   :  { %p288_p2 = scmp.lt.s32.totalorder %s286_s18, %s282_s17 }
 0x19e   :  { %p289_p3 = por %p288_p2, %p287_p1 }
 0x1a0   :  { %p290_p4 = pnand %p289_p3, %p283_p0 }
 0x1a2   :  { %293 = shalt.err (!%p290_p4)
}
 0x1a3   :  { %s307_s4 = smov 32   ;;  %s308_s19 = smov 2  }
 0x1a4   :  { %214 = dma.vmem_to_hbm [thread:$0]  %s209_s3, 32, %s386_s5, [#allocation3], %s307_s4, %s307_s4, %s308_s19  }
 0x1a5   :  { %302 = dma.done.wait [#allocation3], 256  }
 0x1a6   :  { %303 = vsyncadd [#allocation3], 4294967040 }
 0x1a7   :  { %218 = vsyncpa [#allocation3], 1 }

</bundles_post_ra>
